<compile_context>
chip_gen: v7x
topology: tpu7x:2x2x1
jax: 0.10.0
libtpu: 0.0.40
codegen_flags: <defaults>
</compile_context>

<pallas_src>
import functools

import jax
import jax.numpy as jnp
from jax import lax
from jax.experimental import pallas as pl
from jax.experimental.pallas import tpu as pltpu


def _recon_loss_kernel(xg_ref, xp_ref, sg_ref, sp_ref, out_ref,
                       *, alpha, pos_weight_a, pos_weight_s, bce_s,
                       row_tile, n_rows):
    xg = xg_ref[...].astype(jnp.float32)
    xp = xp_ref[...].astype(jnp.float32)
    sg = sg_ref[...].astype(jnp.float32)
    sp = sp_ref[...].astype(jnp.float32)

    ragged = (n_rows % row_tile) != 0           # Python bool (compile-time)
    if ragged:
        # Sanitize the stale rows of the (possibly partial) last input block
        # before any log/sqrt so no NaNs are produced.  Padded-row results
        # land in output columns >= n_rows and are sliced off by the wrapper.
        base = pl.program_id(0) * row_tile
        rows = base + lax.broadcasted_iota(jnp.int32, (row_tile, 1), 0)
        valid = rows < n_rows                    # (R, 1), broadcasts over cols
        xg = jnp.where(valid, xg, 0.0)
        xp = jnp.where(valid, xp, 0.0)
        sg = jnp.where(valid, sg, 0.0)
        sp = jnp.where(valid, sp, 0.5)

    # ---- attribute reconstruction error (per-node) ----
    diff_attr = (xg - xp) ** 2
    if pos_weight_a != 0.5:
        w_a = jnp.where(xg > 0, pos_weight_a, 1.0 - pos_weight_a)
        diff_attr = diff_attr * w_a
    attr_err = jnp.sqrt(jnp.sum(diff_attr, axis=1, keepdims=True))   # (R, 1)

    # ---- structure reconstruction error (per-node) ----
    if bce_s:
        # binary_cross_entropy(pred, gt, reduction='none'); PyTorch clamps log at -100
        log_p = jnp.maximum(jnp.log(sp), -100.0)
        log_1mp = jnp.maximum(jnp.log(1.0 - sp), -100.0)
        diff_stru = -(sg * log_p + (1.0 - sg) * log_1mp)
    else:
        diff_stru = (sg - sp) ** 2
    if pos_weight_s != 0.5:
        w_s = jnp.where(sg > 0, pos_weight_s, 1.0 - pos_weight_s)
        diff_stru = diff_stru * w_s
    stru_err = jnp.sqrt(jnp.sum(diff_stru, axis=1, keepdims=True))   # (R, 1)

    # ---- combined outlier score ----
    score = alpha * attr_err + (1.0 - alpha) * stru_err               # (R, 1)

    # Lane-dense store: three (1, R) rows into one (3, R) block, one
    # writeback DMA per grid step.  The (R,1)->(1,R) relayout rides the XLU.
    out_ref[0:1, :] = score.T
    out_ref[1:2, :] = attr_err.T
    out_ref[2:3, :] = stru_err.T


def _round_up(x, m):
    return ((x + m - 1) // m) * m


def _vmem_capacity_bytes():
    try:
        return int(pltpu.get_tpu_info().vmem_capacity_bytes)
    except Exception:
        return 64 * 1024 * 1024   # conservative: v7x per-TensorCore VMEM


def _choose_row_tile(n_rows, feat, struct, itemsize, vmem_budget):
    """Row tile (multiple of 128) sized for the VMEM budget, capped at 1024,
    and clamped so the grid keeps >= ~8 steps when N allows it."""
    itemsize = max(int(itemsize), 1)
    # double-buffered input blocks + rough f32 temp headroom, per row
    per_row = 2 * 2 * (feat + struct) * itemsize + 8 * (feat + struct)
    tile = vmem_budget // max(per_row, 1)
    tile = (tile // 128) * 128
    tile = max(128, min(1024, tile))
    # mem-bound plateau is ~512-1024; also keep enough grid steps for
    # pipelining / megacore sharding.
    grid_floor_cap = _round_up(max(pl.cdiv(n_rows, 8), 1), 128)
    tile = min(tile, grid_floor_cap)
    tile = max(128, tile)
    return int(tile)


def reconstruction_loss_pallas(gt_attri_sel, pred_attri, partial_mat, pred_adj,
                               *, alpha=0.5, pos_weight_a=0.5, pos_weight_s=0.5,
                               bce_s=False, row_tile=None):
    """Computes (score, attr_error, stru_error), each of shape [N]."""
    assert 0.0 <= alpha <= 1.0, 'weight must be a float between 0 and 1.'
    assert 0.0 <= pos_weight_a <= 1.0 and 0.0 <= pos_weight_s <= 1.0, \
        'positive weight must be a float between 0 and 1.'

    N, F = gt_attri_sel.shape
    Ns, M = pred_adj.shape
    assert Ns == N and partial_mat.shape == (N, M)
    assert pred_attri.shape == (N, F)

    vmem_cap = _vmem_capacity_bytes()
    vmem_budget = vmem_cap // 4
    vmem_limit = int(0.75 * vmem_cap)

    itemsize = max(jnp.dtype(a.dtype).itemsize
                   for a in (gt_attri_sel, pred_attri, partial_mat, pred_adj))
    if row_tile is None:
        row_tile = _choose_row_tile(N, F, M, itemsize, vmem_budget)
    assert row_tile % 128 == 0, 'row_tile must be a multiple of 128'

    n_tiles = pl.cdiv(N, row_tile)
    n_pad = n_tiles * row_tile   # output allocation only; inputs are NOT padded

    kernel = functools.partial(_recon_loss_kernel,
                               alpha=float(alpha),
                               pos_weight_a=float(pos_weight_a),
                               pos_weight_s=float(pos_weight_s),
                               bce_s=bool(bce_s),
                               row_tile=int(row_tile),
                               n_rows=int(N))

    attr_spec = pl.BlockSpec((row_tile, F), lambda i: (i, 0))
    stru_spec = pl.BlockSpec((row_tile, M), lambda i: (i, 0))
    out_spec = pl.BlockSpec((3, row_tile), lambda i: (0, i))   # lane-dense

    stacked = pl.pallas_call(
        kernel,
        out_shape=jax.ShapeDtypeStruct((3, n_pad), jnp.float32),
        grid_spec=pltpu.PrefetchScalarGridSpec(
            num_scalar_prefetch=0,
            grid=(n_tiles,),
            in_specs=[attr_spec, attr_spec, stru_spec, stru_spec],
            out_specs=out_spec,
        ),
        compiler_params=pltpu.CompilerParams(
            dimension_semantics=("parallel",),
            vmem_limit_bytes=vmem_limit,
        ),
    )(gt_attri_sel, pred_attri, partial_mat, pred_adj)

    score = stacked[0, :N]
    attr_err = stacked[1, :N]
    stru_err = stacked[2, :N]
    return score, attr_err, stru_err


class ReconstructionLossJAX:
    """Mirrors the PyTorch ReconstructionLoss.forward semantics."""

    def __init__(self, weight, pos_weight_a, pos_weight_s, bce_s):
        self.weight = weight
        self.pos_weight_a = pos_weight_a
        self.pos_weight_s = pos_weight_s
        self.bce_s = bce_s

    def forward(self, pred_adj, gt_adj, pred_attri, gt_attri, node_mask,
                partial_mat, test=True):
        # jit-compatible replacement for gt_attri[node_mask == 1, :]: the
        # number of selected rows equals pred_attri.shape[0] by construction.
        # Note: if fewer than that many nodes are actually masked, nonzero's
        # size= padding duplicates row 0 (silent under jit), matching the
        # static-shape requirement.  The take stays in gt_attri's own dtype.
        n_masked = pred_attri.shape[0]
        rows = jnp.nonzero(node_mask == 1, size=n_masked)[0]
        gt_attri_sel = jnp.take(gt_attri, rows, axis=0)
        # `test=True` only moves the score to CPU in PyTorch; values identical.
        return reconstruction_loss_pallas(
            gt_attri_sel, pred_attri, partial_mat, pred_adj,
            alpha=self.weight,
            pos_weight_a=self.pos_weight_a,
            pos_weight_s=self.pos_weight_s,
            bce_s=self.bce_s,
        )


def _reference(gt_attri_sel, pred_attri, partial_mat, pred_adj,
               alpha, pos_weight_a, pos_weight_s, bce_s):
    diff_attr = (gt_attri_sel - pred_attri) ** 2
    if pos_weight_a != 0.5:
        diff_attr = jnp.where(gt_attri_sel > 0,
                              diff_attr * pos_weight_a,
                              diff_attr * (1 - pos_weight_a))
    attr_err = jnp.sqrt(jnp.sum(diff_attr, axis=1))
    if bce_s:
        diff_stru = -(partial_mat * jnp.maximum(jnp.log(pred_adj), -100.0)
                      + (1 - partial_mat) * jnp.maximum(jnp.log(1 - pred_adj), -100.0))
    else:
        diff_stru = (partial_mat - pred_adj) ** 2
    if pos_weight_s != 0.5:
        diff_stru = jnp.where(partial_mat > 0,
                              diff_stru * pos_weight_s,
                              diff_stru * (1 - pos_weight_s))
    stru_err = jnp.sqrt(jnp.sum(diff_stru, axis=1))
    score = alpha * attr_err + (1 - alpha) * stru_err
    return score, attr_err, stru_err


if __name__ == "__main__":
    key = jax.random.PRNGKey(0)
    k1, k2, k3, k4, k5, k6 = jax.random.split(key, 6)

    # ---- test 1: small shapes, MSE structure loss, non-trivial pos weights,
    #      through the module wrapper (exercises gather + ragged single tile) ----
    N_total, N_masked, F_dim, M_dim = 24, 16, 32, 16
    weight, pw_a, pw_s = 0.6, 0.7, 0.4

    gt_attri = jax.random.normal(k1, (N_total, F_dim), dtype=jnp.float32)
    mask_rows = jnp.sort(jax.random.permutation(k5, N_total)[:N_masked])
    node_mask = jnp.zeros((N_total,), dtype=jnp.int32).at[mask_rows].set(1)
    pred_attri = jax.random.normal(k2, (N_masked, F_dim), dtype=jnp.float32)
    partial_mat = (jax.random.uniform(k3, (N_masked, M_dim)) > 0.7).astype(jnp.float32)
    pred_adj = jax.nn.sigmoid(jax.random.normal(k4, (N_masked, M_dim), dtype=jnp.float32))
    gt_adj = partial_mat  # unused by forward (matches the PyTorch module)

    module = ReconstructionLossJAX(weight, pw_a, pw_s, False)
    score, attr_err, stru_err = module.forward(
        pred_adj, gt_adj, pred_attri, gt_attri, node_mask, partial_mat, test=True)
    jax.block_until_ready((score, attr_err, stru_err))

    gt_sel = jnp.take(gt_attri, jnp.nonzero(node_mask == 1, size=N_masked)[0], axis=0)
    r_score, r_attr, r_stru = _reference(gt_sel, pred_attri, partial_mat, pred_adj,
                                         weight, pw_a, pw_s, False)
    assert jnp.allclose(score, r_score, atol=1e-5, rtol=1e-5)
    assert jnp.allclose(attr_err, r_attr, atol=1e-5, rtol=1e-5)
    assert jnp.allclose(stru_err, r_stru, atol=1e-5, rtol=1e-5)

    # ---- test 2: BCE structure loss (pos weights = 0.5 path), f32 inputs ----
    score2, attr2, stru2 = reconstruction_loss_pallas(
        gt_sel, pred_attri, partial_mat, pred_adj,
        alpha=0.3, pos_weight_a=0.5, pos_weight_s=0.5, bce_s=True)
    jax.block_until_ready((score2, attr2, stru2))
    ref2 = _reference(gt_sel, pred_attri, partial_mat, pred_adj, 0.3, 0.5, 0.5, True)
    for got, ref in zip((score2, attr2, stru2), ref2):
        assert jnp.allclose(got, ref, atol=1e-5, rtol=1e-5)

    # ---- test 3: bf16 inputs, N not a multiple of the tile, multi-tile grid
    #      with a ragged last tile (no input padding) ----
    Nm, Fm, Mm = 1000, 256, 384
    ka, kb, kc, kd = jax.random.split(k6, 4)
    g3 = jax.random.normal(ka, (Nm, Fm), dtype=jnp.float32).astype(jnp.bfloat16)
    p3 = jax.random.normal(kb, (Nm, Fm), dtype=jnp.float32).astype(jnp.bfloat16)
    s3 = (jax.random.uniform(kc, (Nm, Mm)) > 0.8).astype(jnp.bfloat16)
    a3 = jax.nn.sigmoid(
        jax.random.normal(kd, (Nm, Mm), dtype=jnp.float32)).astype(jnp.bfloat16)

    score3, attr3, stru3 = reconstruction_loss_pallas(
        g3, p3, s3, a3, alpha=0.6, pos_weight_a=0.7, pos_weight_s=0.4,
        bce_s=False, row_tile=256)
    jax.block_until_ready((score3, attr3, stru3))
    ref3 = _reference(g3.astype(jnp.float32), p3.astype(jnp.float32),
                      s3.astype(jnp.float32), a3.astype(jnp.float32),
                      0.6, 0.7, 0.4, False)
    for got, ref in zip((score3, attr3, stru3), ref3):
        assert jnp.allclose(got, ref, atol=1e-4, rtol=1e-4)

    # ---- test 4: auto row_tile, ragged tail, MSE path, f32 ----
    score4, attr4, stru4 = reconstruction_loss_pallas(
        g3.astype(jnp.float32), p3.astype(jnp.float32),
        s3.astype(jnp.float32), a3.astype(jnp.float32),
        alpha=0.5, pos_weight_a=0.5, pos_weight_s=0.5, bce_s=False)
    jax.block_until_ready((score4, attr4, stru4))
    ref4 = _reference(g3.astype(jnp.float32), p3.astype(jnp.float32),
                      s3.astype(jnp.float32), a3.astype(jnp.float32),
                      0.5, 0.5, 0.5, False)
    for got, ref in zip((score4, attr4, stru4), ref4):
        assert jnp.allclose(got, ref, atol=1e-5, rtol=1e-5)

    print("KERNEL_OK")
</pallas_src>

<mosaic_0001>
module attributes {stable_mosaic.version = 11 : i64} {
  func.func @_recon_loss_kernel(%arg0: i32, %arg1: memref<128x32xf32, #tpu.memory_space<vmem>>, %arg2: memref<128x32xf32, #tpu.memory_space<vmem>>, %arg3: memref<128x16xf32, #tpu.memory_space<vmem>>, %arg4: memref<128x16xf32, #tpu.memory_space<vmem>>, %arg5: memref<3x128xf32, #tpu.memory_space<vmem>>) attributes {dimension_semantics = [#tpu.dimension_semantics<parallel>], iteration_bounds = array<i64: 1>, scalar_prefetch = 0 : i64, scratch_operands = 0 : i64, tpu.core_type = #tpu.core_type<tc>, window_params = [{transform_indices = @transform_0, window_bounds = array<i64: 128, 32>}, {transform_indices = @transform_1, window_bounds = array<i64: 128, 32>}, {transform_indices = @transform_2, window_bounds = array<i64: 128, 16>}, {transform_indices = @transform_3, window_bounds = array<i64: 128, 16>}, {transform_indices = @transform_4, window_bounds = array<i64: 3, 128>}]} {
    %c0 = arith.constant 0 : index
    %c0_0 = arith.constant 0 : index
    %0 = vector.load %arg1[%c0, %c0_0] : memref<128x32xf32, #tpu.memory_space<vmem>>, vector<128x32xf32>
    %c0_1 = arith.constant 0 : index
    %c0_2 = arith.constant 0 : index
    %1 = vector.load %arg2[%c0_1, %c0_2] : memref<128x32xf32, #tpu.memory_space<vmem>>, vector<128x32xf32>
    %c0_3 = arith.constant 0 : index
    %c0_4 = arith.constant 0 : index
    %2 = vector.load %arg3[%c0_3, %c0_4] : memref<128x16xf32, #tpu.memory_space<vmem>>, vector<128x16xf32>
    %c0_5 = arith.constant 0 : index
    %c0_6 = arith.constant 0 : index
    %3 = vector.load %arg4[%c0_5, %c0_6] : memref<128x16xf32, #tpu.memory_space<vmem>>, vector<128x16xf32>
    %c128_i32 = arith.constant 128 : i32
    %4 = arith.muli %arg0, %c128_i32 : i32
    %5 = tpu.iota {dimensions = array<i32: 0>} : vector<128x1xi32>
    %6 = vector.broadcast %4 : i32 to vector<128x1xi32>
    %7 = arith.addi %6, %5 : vector<128x1xi32>
    %c16_i32 = arith.constant 16 : i32
    %8 = vector.broadcast %c16_i32 : i32 to vector<128x1xi32>
    %9 = arith.cmpi slt, %7, %8 : vector<128x1xi32>
    %cst = arith.constant 0.000000e+00 : f32
    %10 = vector.shape_cast %9 : vector<128x1xi1> to vector<128x1xi1>
    %11 = vector.broadcast %10 : vector<128x1xi1> to vector<128x32xi1>
    %12 = vector.broadcast %cst : f32 to vector<128x32xf32>
    %13 = arith.select %11, %0, %12 : vector<128x32xi1>, vector<128x32xf32>
    %cst_7 = arith.constant 0.000000e+00 : f32
    %14 = vector.shape_cast %9 : vector<128x1xi1> to vector<128x1xi1>
    %15 = vector.broadcast %14 : vector<128x1xi1> to vector<128x32xi1>
    %16 = vector.broadcast %cst_7 : f32 to vector<128x32xf32>
    %17 = arith.select %15, %1, %16 : vector<128x32xi1>, vector<128x32xf32>
    %cst_8 = arith.constant 0.000000e+00 : f32
    %18 = vector.shape_cast %9 : vector<128x1xi1> to vector<128x1xi1>
    %19 = vector.broadcast %18 : vector<128x1xi1> to vector<128x16xi1>
    %20 = vector.broadcast %cst_8 : f32 to vector<128x16xf32>
    %21 = arith.select %19, %2, %20 : vector<128x16xi1>, vector<128x16xf32>
    %cst_9 = arith.constant 5.000000e-01 : f32
    %22 = vector.shape_cast %9 : vector<128x1xi1> to vector<128x1xi1>
    %23 = vector.broadcast %22 : vector<128x1xi1> to vector<128x16xi1>
    %24 = vector.broadcast %cst_9 : f32 to vector<128x16xf32>
    %25 = arith.select %23, %3, %24 : vector<128x16xi1>, vector<128x16xf32>
    %26 = arith.subf %13, %17 : vector<128x32xf32>
    %27 = arith.mulf %26, %26 : vector<128x32xf32>
    %cst_10 = arith.constant 0.000000e+00 : f32
    %28 = vector.broadcast %cst_10 : f32 to vector<128x32xf32>
    %29 = arith.cmpf ogt, %13, %28 : vector<128x32xf32>
    %cst_11 = arith.constant 0.699999988 : f32
    %cst_12 = arith.constant 3.000000e-01 : f32
    %30 = vector.broadcast %cst_11 : f32 to vector<128x32xf32>
    %31 = vector.broadcast %cst_12 : f32 to vector<128x32xf32>
    %32 = arith.select %29, %30, %31 : vector<128x32xi1>, vector<128x32xf32>
    %33 = arith.mulf %27, %32 : vector<128x32xf32>
    %cst_13 = arith.constant dense<0.000000e+00> : vector<128xf32>
    %34 = vector.multi_reduction <add>, %33, %cst_13 [1] : vector<128x32xf32> to vector<128xf32>
    %35 = vector.shape_cast %34 : vector<128xf32> to vector<128x1xf32>
    %36 = math.sqrt %35 : vector<128x1xf32>
    %37 = arith.subf %21, %25 : vector<128x16xf32>
    %38 = arith.mulf %37, %37 : vector<128x16xf32>
    %cst_14 = arith.constant 0.000000e+00 : f32
    %39 = vector.broadcast %cst_14 : f32 to vector<128x16xf32>
    %40 = arith.cmpf ogt, %21, %39 : vector<128x16xf32>
    %cst_15 = arith.constant 4.000000e-01 : f32
    %cst_16 = arith.constant 6.000000e-01 : f32
    %41 = vector.broadcast %cst_15 : f32 to vector<128x16xf32>
    %42 = vector.broadcast %cst_16 : f32 to vector<128x16xf32>
    %43 = arith.select %40, %41, %42 : vector<128x16xi1>, vector<128x16xf32>
    %44 = arith.mulf %38, %43 : vector<128x16xf32>
    %cst_17 = arith.constant dense<0.000000e+00> : vector<128xf32>
    %45 = vector.multi_reduction <add>, %44, %cst_17 [1] : vector<128x16xf32> to vector<128xf32>
    %46 = vector.shape_cast %45 : vector<128xf32> to vector<128x1xf32>
    %47 = math.sqrt %46 : vector<128x1xf32>
    %cst_18 = arith.constant 6.000000e-01 : f32
    %48 = vector.broadcast %cst_18 : f32 to vector<128x1xf32>
    %49 = arith.mulf %48, %36 : vector<128x1xf32>
    %cst_19 = arith.constant 4.000000e-01 : f32
    %50 = vector.broadcast %cst_19 : f32 to vector<128x1xf32>
    %51 = arith.mulf %50, %47 : vector<128x1xf32>
    %52 = arith.addf %49, %51 : vector<128x1xf32>
    %53 = tpu.transpose %52, [1, 0] : vector<128x1xf32> -> vector<1x128xf32>
    %c0_20 = arith.constant 0 : index
    %c0_21 = arith.constant 0 : index
    %54 = vector.load %arg5[%c0_20, %c0_21] : memref<3x128xf32, #tpu.memory_space<vmem>>, vector<1x128xf32>
    tpu.vector_store %arg5[%c0_20, %c0_21], %53 {strides = array<i32>} : memref<3x128xf32, #tpu.memory_space<vmem>>, vector<1x128xf32>,
    %55 = tpu.transpose %36, [1, 0] : vector<128x1xf32> -> vector<1x128xf32>
    %c1 = arith.constant 1 : index
    %c0_22 = arith.constant 0 : index
    %56 = vector.load %arg5[%c1, %c0_22] : memref<3x128xf32, #tpu.memory_space<vmem>>, vector<1x128xf32>
    tpu.vector_store %arg5[%c1, %c0_22], %55 {strides = array<i32>} : memref<3x128xf32, #tpu.memory_space<vmem>>, vector<1x128xf32>,
    %57 = tpu.transpose %47, [1, 0] : vector<128x1xf32> -> vector<1x128xf32>
    %c2 = arith.constant 2 : index
    %c0_23 = arith.constant 0 : index
    %58 = vector.load %arg5[%c2, %c0_23] : memref<3x128xf32, #tpu.memory_space<vmem>>, vector<1x128xf32>
    tpu.vector_store %arg5[%c2, %c0_23], %57 {strides = array<i32>} : memref<3x128xf32, #tpu.memory_space<vmem>>, vector<1x128xf32>,
    return
  }
  func.func @transform_0(%arg0: i32) -> (i32, i32) {
    %c0_i32 = arith.constant 0 : i32
    %c0_i32_0 = arith.constant 0 : i32
    return %arg0, %c0_i32 : i32, i32
  }
  func.func @transform_1(%arg0: i32) -> (i32, i32) {
    %c0_i32 = arith.constant 0 : i32
    %c0_i32_0 = arith.constant 0 : i32
    return %arg0, %c0_i32 : i32, i32
  }
  func.func @transform_2(%arg0: i32) -> (i32, i32) {
    %c0_i32 = arith.constant 0 : i32
    %c0_i32_0 = arith.constant 0 : i32
    return %arg0, %c0_i32 : i32, i32
  }
  func.func @transform_3(%arg0: i32) -> (i32, i32) {
    %c0_i32 = arith.constant 0 : i32
    %c0_i32_0 = arith.constant 0 : i32
    return %arg0, %c0_i32 : i32, i32
  }
  func.func @transform_4(%arg0: i32) -> (i32, i32) {
    %c0_i32 = arith.constant 0 : i32
    %c0_i32_0 = arith.constant 0 : i32
    return %c0_i32, %arg0 : i32, i32
  }
}

</mosaic_0001>

<bundles_post_ra>
// kernel: tpu_custom_call.1
= control target key start
LH: loop header
LB: loop body
LE: loop exit
PB: predicated region body
PF: predicated region fallthrough
CT: control target
= control target key end

     0   :  { %9 = vsyncpa [#allocation3], 0  ;;  %s1617_s0 = inlined_call_operand.hbm [shape: f32[16,32], index: 0, kind: input, shape index: {}]   ;;  %s1618_s1 = inlined_call_operand.hbm [shape: f32[16,32], index: 1, kind: input, shape index: {}]   ;;  %s1619_s2 = inlined_call_operand.hbm [shape: f32[16,16], index: 2, kind: input, shape index: {}]   ;;  %s1620_s3 = inlined_call_operand.hbm [shape: f32[16,16], index: 3, kind: input, shape index: {}]   ;;  %s1621_s4 = inlined_call_operand.hbm [shape: f32[3,128], index: 4, kind: output, shape index: {}]  }
   0x1   :  { %10 = vsyncpa [#allocation6], 0 }
   0x2   :  { %11 = vsyncpa [#allocation9], 0 }
   0x3   :  { %12 = vsyncpa [#allocation4], 0 }
   0x4   :  { %17 = vsyncadd [#allocation3], 1792  ;;  %s1122_s15 = smov [#allocation2]   ;;  %s1004_s19 = scalar_lea.hbm %s1617_s0, 256 }
   0x5   :  { %s18_s16 = sshll.u32 %s1122_s15, 4  ;;  %p1005_p0 = scmp.ne.s32.totalorder %s1617_s0, %s1004_s19  ;;  %s19_s16 = int_to_ptr.vmem [resolvable:$true] %s18_s16 }
   0x6   :  { %p1008_p1 = scmp.lt.u32.totalorder %s1004_s19, %s1617_s0 }
   0x8   :  { %p1010_p2 = pnand %p1008_p1, %p1005_p0 }
   0xa   :  { %1013 = shalt.err (!%p1010_p2)
}
   0xb   :  { %s1014_s24 = scalar_lea.vmem %s19_s16, 256  ;;  %s1018_s25 = scalar_lea.vmem %s19_s16, 2048 }
   0xc   :  { %p1015_p3 = scmp.ne.s32.totalorder %s19_s16, %s1014_s24  ;;  %p1019_p4 = scmp.lt.s32.totalorder %s19_s16, %s19_s16 }
   0xd   :  { %p1020_p5 = scmp.lt.s32.totalorder %s1018_s25, %s1014_s24 }
   0xf   :  { %p1021_p6 = por %p1020_p5, %p1019_p4 }
  0x11   :  { %p1022_p7 = pnand %p1021_p6, %p1015_p3 }
  0x13   :  { %1025 = shalt.err (!%p1022_p7)
}
  0x14   :  { %s1123_s26 = smov 128   ;;  %s1124_s27 = smov 8  }
  0x15   :  { %24 = dma.hbm_to_vmem [thread:$0]  %s1617_s0, 256, %s19_s16, [#allocation3], %s1123_s26, %s1123_s26, %s1124_s27  }
  0x16   :  { %29 = vsyncadd [#allocation6], 1792  ;;  %s1125_s30 = smov [#allocation5]   ;;  %s1026_s8 = scalar_lea.hbm %s1618_s1, 256 }
  0x17   :  { %s30_s5 = sshll.u32 %s1125_s30, 4  ;;  %p1027_p8 = scmp.ne.s32.totalorder %s1618_s1, %s1026_s8  ;;  %s31_s5 = int_to_ptr.vmem [resolvable:$true] %s30_s5 }
  0x18   :  { %p1030_p9 = scmp.lt.u32.totalorder %s1026_s8, %s1618_s1 }
  0x1a   :  { %p1032_p10 = pnand %p1030_p9, %p1027_p8 }
  0x1c   :  { %1035 = shalt.err (!%p1032_p10)
}
  0x1d   :  { %s1036_s13 = scalar_lea.vmem %s31_s5, 256  ;;  %s1040_s0 = scalar_lea.vmem %s31_s5, 2048 }
  0x1e   :  { %p1037_p11 = scmp.ne.s32.totalorder %s31_s5, %s1036_s13  ;;  %p1041_p12 = scmp.lt.s32.totalorder %s31_s5, %s31_s5 }
  0x1f   :  { %p1042_p13 = scmp.lt.s32.totalorder %s1040_s0, %s1036_s13 }
  0x21   :  { %p1043_p0 = por %p1042_p13, %p1041_p12 }
  0x23   :  { %p1044_p1 = pnand %p1043_p0, %p1037_p11 }
  0x25   :  { %1047 = shalt.err (!%p1044_p1)
}
  0x26   :  { %36 = dma.hbm_to_vmem [thread:$0]  %s1618_s1, 256, %s31_s5, [#allocation6], %s1123_s26, %s1123_s26, %s1124_s27  }
  0x27   :  { %41 = vsyncadd [#allocation6], 1792  ;;  %s1126_s16 = smov [#allocation7]   ;;  %s1048_s20 = scalar_lea.hbm %s1619_s2, 256 }
  0x28   :  { %s42_s17 = sshll.u32 %s1126_s16, 4  ;;  %p1049_p2 = scmp.ne.s32.totalorder %s1619_s2, %s1048_s20  ;;  %s43_s17 = int_to_ptr.vmem [resolvable:$true] %s42_s17 }
  0x29   :  { %p1052_p3 = scmp.lt.u32.totalorder %s1048_s20, %s1619_s2 }
  0x2b   :  { %p1054_p4 = pnand %p1052_p3, %p1049_p2 }
  0x2d   :  { %1057 = shalt.err (!%p1054_p4)
}
  0x2e   :  { %s1058_s25 = scalar_lea.vmem %s43_s17, 256  ;;  %s1062_s1 = scalar_lea.vmem %s43_s17, 2048 }
  0x2f   :  { %p1059_p5 = scmp.ne.s32.totalorder %s43_s17, %s1058_s25  ;;  %p1063_p6 = scmp.lt.s32.totalorder %s43_s17, %s43_s17 }
  0x30   :  { %p1064_p7 = scmp.lt.s32.totalorder %s1062_s1, %s1058_s25 }
  0x32   :  { %p1065_p8 = por %p1064_p7, %p1063_p6 }
  0x34   :  { %p1066_p9 = pnand %p1065_p8, %p1059_p5 }
  0x36   :  { %1069 = shalt.err (!%p1066_p9)
}
  0x37   :  { %48 = dma.hbm_to_vmem [thread:$0]  %s1619_s2, 256, %s43_s17, [#allocation6], %s1123_s26, %s1123_s26, %s1124_s27  }
  0x38   :  { %53 = vsyncadd [#allocation9], 1792  ;;  %s1127_s30 = smov [#allocation8]   ;;  %s1070_s8 = scalar_lea.hbm %s1620_s3, 256 }
  0x39   :  { %s54_s5 = sshll.u32 %s1127_s30, 4  ;;  %p1071_p10 = scmp.ne.s32.totalorder %s1620_s3, %s1070_s8  ;;  %s55_s5 = int_to_ptr.vmem [resolvable:$true] %s54_s5 }
  0x3a   :  { %p1074_p11 = scmp.lt.u32.totalorder %s1070_s8, %s1620_s3 }
  0x3c   :  { %p1076_p12 = pnand %p1074_p11, %p1071_p10 }
  0x3e   :  { %1079 = shalt.err (!%p1076_p12)
}
  0x3f   :  { %s1080_s13 = scalar_lea.vmem %s55_s5, 256  ;;  %s1084_s2 = scalar_lea.vmem %s55_s5, 2048 }
  0x40   :  { %p1081_p13 = scmp.ne.s32.totalorder %s55_s5, %s1080_s13  ;;  %p1085_p0 = scmp.lt.s32.totalorder %s55_s5, %s55_s5 }
  0x41   :  { %p1086_p1 = scmp.lt.s32.totalorder %s1084_s2, %s1080_s13 }
  0x43   :  { %p1087_p2 = por %p1086_p1, %p1085_p0 }
  0x45   :  { %p1088_p3 = pnand %p1087_p2, %p1081_p13 }
  0x47   :  { %1091 = shalt.err (!%p1088_p3)
}
  0x48   :  { %60 = dma.hbm_to_vmem [thread:$0]  %s1620_s3, 256, %s55_s5, [#allocation9], %s1123_s26, %s1123_s26, %s1124_s27  }
  0x49   :  { %1114 = dma.done.wait [#allocation3], 2048  }
  0x4a   :  { %1115 = vsyncadd [#allocation3], 4294965248 }
  0x4b   :  { %1116 = dma.done.wait [#allocation6], 4096  }
  0x4c   :  { %1117 = vsyncadd [#allocation6], 4294963200 }
  0x4d   :  { %1118 = dma.done.wait [#allocation9], 2048  }
  0x4e   :  { %1119 = vsyncadd [#allocation9], 4294965248  ;;  %v1128_v0 = vmov 0.0   ;;  %v73_v1 = vld [vmem:[#allocation2] sm:$0xff]  ;;  %v74_v3 = vld [vmem:[#allocation2 + $0x8] sm:$0xff]  ;;  %vm364_vm2 = vcmask 261120  }
  0x4f   :  { %378 = vadd.xlane.f32.xlu0 %v1128_v0  ;;  %372 = vadd.xlane.f32.xlu1 %v1128_v0  ;;  %v89_v2 = vld [vmem:[#allocation5] sm:$0xff]  ;;  %vm316_vm0 = vcmp.gt.f32.partialorder %v73_v1, 0.0  ;;  %v90_v5 = vld [vmem:[#allocation5 + $0x8] sm:$0xff]  ;;  %vm317_vm1 = vcmp.gt.f32.partialorder %v74_v3, 0.0  ;;  %v1129_v8 = vmov 0.3  }
  0x50   :  { %v284_v4 = vsub.f32 %v73_v1, %v89_v2  ;;  %v106_v6 = vld [vmem:[#allocation7 + $0x8] sm:$0xff]  ;;  %v332_v9 = vsel %vm316_vm0, 0.7, %v1129_v8  ;;  %v285_v10 = vsub.f32 %v74_v3, %v90_v5  ;;  %v333_v12 = vsel %vm317_vm1, 0.7, %v1129_v8  ;;  %v105_v17 = vld [vmem:[#allocation7] sm:$0xff] }
  0x51   :  { %v122_v7 = vld [vmem:[#allocation8 + $0x8] sm:$0xff]  ;;  %vm558_vm3 = vcmp.gt.f32.partialorder %v106_v6, 0.0  ;;  %v121_v18 = vld [vmem:[#allocation8] sm:$0xff]  ;;  %v1130_v21 = vmov 0.6   ;;  %vm557_vm4 = vcmp.gt.f32.partialorder %v105_v17, 0.0 }
  0x52   :  { %v300_v11 = vmul.f32 %v284_v4, %v284_v4  ;;  %v526_v13 = vsub.f32 %v106_v6, %v122_v7  ;;  %v301_v14 = vmul.f32 %v285_v10, %v285_v10  ;;  %v574_v22 = vsel %vm558_vm3, 0.4, %v1130_v21  ;;  %s1131_s3 = smov [#allocation10]  }
  0x53   :  { %384 = vadd.xlane.f32.xlu0 %v1128_v0  ;;  %375 = vadd.xlane.f32.xlu1 %v1128_v0  ;;  %v525_v24 = vsub.f32 %v105_v17, %v121_v18  ;;  %vm605_vm5 = vcmask 130048   ;;  %v573_v27 = vsel %vm557_vm4, 0.4, %v1130_v21  ;;  %s919_s26 = sshll.u32 %s1131_s3, 4  ;;  %s920_s26 = int_to_ptr.vmem [resolvable:$true] %s919_s26 }
  0x54   :  { %v348_v15 = vmul.f32 %v332_v9, %v300_v11  ;;  %v349_v16 = vmul.f32 %v333_v12, %v301_v14  ;;  %v542_v20 = vmul.f32 %v526_v13, %v526_v13  ;;  %v612_v30 = vsel %vm605_vm5, 0.15, %v1128_v0  ;;  %s1092_s27 = scalar_lea.vmem %s920_s26, 64  ;;  %p1097_p5 = scmp.lt.s32.totalorder %s920_s26, %s920_s26 }
  0x55   :  { %v541_v26 = vmul.f32 %v525_v24, %v525_v24  ;;  %p1093_p4 = scmp.ne.s32.totalorder %s920_s26, %s1092_s27  ;;  %p1098_p6 = scmp.lt.s32.totalorder %s1092_s27, %s1092_s27 }
  0x56   :  { %v365_v19 = vsel %vm364_vm2, %v348_v15, 0.0  ;;  %v368_v23 = vsel %vm364_vm2, %v349_v16, 0.0  ;;  %v590_v25 = vmul.f32 %v574_v22, %v542_v20 }
  0x57   :  { %381 = vadd.xlane.f32.xlu1 %v1128_v0  ;;  %366 = vadd.xlane.f32.xlu0 %v365_v19  ;;  %v589_v29 = vmul.f32 %v573_v27, %v541_v26  ;;  %p1099_p7 = por %p1098_p6, %p1097_p5 }
  0x58   :  { %v609_v28 = vsel %vm605_vm5, %v590_v25, 0.0 }
  0x59   :  { %v606_v31 = vsel %vm605_vm5, %v589_v29, 0.0  ;;  %p1100_p8 = pnand %p1099_p7, %p1093_p4 }
  0x5b   :  { %387 = vadd.xlane.f32.xlu1 %v1128_v0  ;;  %369 = vadd.xlane.f32.xlu0 %v368_v23 }
  0x5f   :  { %393 = vadd.xlane.f32.xlu1 %v1128_v0  ;;  %390 = vadd.xlane.f32.xlu0 %v1128_v0 }
  0x63   :  { %399 = vadd.xlane.f32.xlu1 %v1128_v0  ;;  %396 = vadd.xlane.f32.xlu0 %v1128_v0 }
  0x67   :  { %610 = vadd.xlane.f32.xlu1 %v609_v28  ;;  %607 = vadd.xlane.f32.xlu0 %v606_v31 }
  0x6b   :  { %616 = vadd.xlane.f32.xlu1 %v612_v30  ;;  %613 = vadd.xlane.f32.xlu0 %v612_v30 }
  0x6f   :  { %622 = vadd.xlane.f32.xlu1 %v612_v30  ;;  %619 = vadd.xlane.f32.xlu0 %v612_v30 }
  0x73   :  { %628 = vadd.xlane.f32.xlu1 %v612_v30  ;;  %625 = vadd.xlane.f32.xlu0 %v612_v30 }
  0x77   :  { %634 = vadd.xlane.f32.xlu1 %v612_v30  ;;  %631 = vadd.xlane.f32.xlu0 %v612_v30 }
  0x7b   :  { %640 = vadd.xlane.f32.xlu1 %v612_v30  ;;  %637 = vadd.xlane.f32.xlu0 %v612_v30 }
  0x7f   :  { %643 = vadd.xlane.f32.xlu1 %v612_v30  ;;  %402 = vadd.xlane.f32.xlu0 %v1128_v0 }
  0x83   :  { %646 = vadd.xlane.f32.xlu1 %v612_v30  ;;  %405 = vadd.xlane.f32.xlu0 %v1128_v0 }
  0x87   :  { %649 = vadd.xlane.f32.xlu1 %v612_v30  ;;  %408 = vadd.xlane.f32.xlu0 %v1128_v0 }
  0x8b   :  { %652 = vadd.xlane.f32.xlu1 %v612_v30  ;;  %411 = vadd.xlane.f32.xlu0 %v1128_v0 }
  0xdc   :  { %v1232_v32 = vpop.xlane.xlu1 %372  ;;  %v1234_v33 = vpop.xlane.xlu0 %378 }
  0xdd   :  { %vm429_vm10 = vcmp.eq.f32.partialorder %v1232_v32, inf  ;;  %vm431_vm11 = vcmp.eq.f32.partialorder %v1232_v32, 0.0  ;;  %v432_v2 = vand.u32 2147483648, %v1232_v32  ;;  %vm443_vm12 = vcmp.eq.f32.partialorder %v1234_v33, inf }
  0xde   :  { %vm445_vm14 = vcmp.eq.f32.partialorder %v1234_v33, 0.0  ;;  %v446_v5 = vand.u32 2147483648, %v1234_v33 }
  0xe0   :  { %v1236_v34 = vpop.xlane.xlu1 %375  ;;  %v1240_v36 = vpop.xlane.xlu0 %384 }
  0xe1   :  { %vm436_vm13 = vcmp.eq.f32.partialorder %v1236_v34, inf  ;;  %vm438_vm15 = vcmp.eq.f32.partialorder %v1236_v34, 0.0  ;;  %v439_v6 = vand.u32 2147483648, %v1236_v34  ;;  %vm457_vm0 = vcmp.eq.f32.partialorder %v1240_v36, inf }
  0xe2   :  { %vm459_vm1 = vcmp.eq.f32.partialorder %v1240_v36, 0.0  ;;  %v460_v16 = vand.u32 2147483648, %v1240_v36 }
  0xe4   :  { %v1238_v35 = vpop.xlane.xlu1 %381  ;;  %v367_v38 = vpop.xlane.xlu0 %366 }
  0xe5   :  { %940 = vrsqrt.f32 %v367_v38  ;;  %vm415_vm6 = vcmp.eq.f32.partialorder %v367_v38, inf  ;;  %v418_v48 = vand.u32 2147483648, %v367_v38  ;;  %vm417_vm7 = vcmp.eq.f32.partialorder %v367_v38, 0.0 }
  0xe6   :  { %942 = vrsqrt.f32 %v1232_v32  ;;  %vm450_vm2 = vcmp.eq.f32.partialorder %v1238_v35, inf  ;;  %vm452_vm3 = vcmp.eq.f32.partialorder %v1238_v35, 0.0  ;;  %v453_v17 = vand.u32 2147483648, %v1238_v35 }
  0xe7   :  { %944 = vrsqrt.f32 %v1234_v33 }
  0xe8   :  { %v1242_v37 = vpop.xlane.xlu1 %387  ;;  %v370_v40 = vpop.xlane.xlu0 %369 }
  0xe9   :  { %946 = vrsqrt.f32 %v370_v40  ;;  %vm422_vm8 = vcmp.eq.f32.partialorder %v370_v40, inf  ;;  %v425_v58 = vand.u32 2147483648, %v370_v40  ;;  %vm424_vm9 = vcmp.eq.f32.partialorder %v370_v40, 0.0 }
  0xea   :  { %948 = vrsqrt.f32 %v1236_v34  ;;  %v467_v18 = vand.u32 2147483648, %v1242_v37 }
  0xeb   :  { %950 = vrsqrt.f32 %v1240_v36 }
  0xec   :  { %v1244_v39 = vpop.xlane.xlu1 %393  ;;  %v1251_v42 = vpop.xlane.xlu0 %390  ;;  %952 = vrsqrt.f32 %v1238_v35 }
  0xef   :  { %v941_v44 = vpop.eup %940 }
  0xf0   :  { %v1248_v41 = vpop.xlane.xlu1 %399  ;;  %v1258_v45 = vpop.xlane.xlu0 %396  ;;  %v414_v46 = vmul.f32 %v941_v44, %v367_v38 }
  0xf1   :  { %v943_v47 = vpop.eup %942 }
  0xf2   :  { %v945_v49 = vpop.eup %944  ;;  %v416_v50 = vsel %vm415_vm6, %v367_v38, %v414_v46  ;;  %v428_v56 = vmul.f32 %v943_v47, %v1232_v32 }
  0xf3   :  { %v947_v51 = vpop.eup %946  ;;  %v1260_v52 = vsel %vm417_vm7, %v418_v48, %v416_v50  ;;  %v442_v60 = vmul.f32 %v945_v49, %v1234_v33 }
  0xf4   :  { %v1255_v43 = vpop.xlane.xlu1 %610  ;;  %847 = vxpose.xlu1.b32.start [1/16] (narrow) %v1260_v52, 8  ;;  %v1265_v54 = vpop.xlane.xlu0 %607  ;;  %v421_v55 = vmul.f32 %v947_v51, %v370_v40  ;;  %v430_v1 = vsel %vm429_vm10, %v1232_v32, %v428_v56 }
  0xf5   :  { %954 = vrsqrt.f32 %v1255_v43  ;;  %v949_v57 = vpop.eup %948  ;;  %v444_v7 = vsel %vm443_vm12, %v1234_v33, %v442_v60  ;;  %v433_v8 = vsel %vm431_vm11, %v432_v2, %v430_v1  ;;  %vm663_vm4 = vcmp.eq.f32.partialorder %v1255_v43, inf }
  0xf6   :  { %956 = vrsqrt.f32 %v1265_v54  ;;  %v423_v59 = vsel %vm422_vm8, %v370_v40, %v421_v55  ;;  %v951_v61 = vpop.eup %950  ;;  %v435_v3 = vmul.f32 %v949_v57, %v1236_v34  ;;  %v447_v15 = vsel %vm445_vm14, %v446_v5, %v444_v7 }
  0xf7   :  { %v1271_v62 = vsel %vm424_vm9, %v425_v58, %v423_v59  ;;  %v953_v63 = vpop.eup %952  ;;  %v456_v9 = vmul.f32 %v951_v61, %v1240_v36  ;;  %v1323_v23 = vmul.f32 0.6, %v447_v15  ;;  %v1328_v28 = vmul.f32 0.6, %v433_v8 }
  0xf8   :  { %v1262_v53 = vpop.xlane.xlu1 %616  ;;  %848 = vxpose.xlu1.b32.cont [2/16] (narrow) %v1271_v62, 8  ;;  %v1276_v0 = vpop.xlane.xlu0 %613  ;;  %v437_v13 = vsel %vm436_vm13, %v1236_v34, %v435_v3  ;;  %v449_v14 = vmul.f32 %v953_v63, %v1238_v35  ;;  %vm656_vm5 = vcmp.eq.f32.partialorder %v1265_v54, inf  ;;  %v659_v29 = vand.u32 2147483648, %v1265_v54 }
  0xf9   :  { %958 = vrsqrt.f32 %v1262_v53  ;;  %v440_v20 = vsel %vm438_vm15, %v439_v6, %v437_v13  ;;  %v458_v21 = vsel %vm457_vm0, %v1240_v36, %v456_v9  ;;  %v666_v30 = vand.u32 2147483648, %v1255_v43 }
  0xfa   :  { %960 = vrsqrt.f32 %v1276_v0  ;;  %v451_v24 = vsel %vm450_vm2, %v1238_v35, %v449_v14  ;;  %vm658_vm6 = vcmp.eq.f32.partialorder %v1265_v54, 0.0  ;;  %v461_v33 = vsel %vm459_vm1, %v460_v16, %v458_v21 }
  0xfb   :  { %962 = vrsqrt.f32 %v1242_v37  ;;  %vm665_vm7 = vcmp.eq.f32.partialorder %v1255_v43, 0.0  ;;  %v1343_v38 = vsel %vm452_vm3, %v453_v17, %v451_v24  ;;  %vm464_vm8 = vcmp.eq.f32.partialorder %v1242_v37, inf }
  0xfc   :  { %964 = vrsqrt.f32 %v1244_v39  ;;  %v1297_v11 = vpop.xlane.xlu1 %622  ;;  %849 = vxpose.xlu1.b32.cont [3/16] (narrow) %v433_v8, 8  ;;  %v1299_v12 = vpop.xlane.xlu0 %619  ;;  %v766_v36 = vmul.f32 0.6, %v1260_v52  ;;  %vm670_vm9 = vcmp.eq.f32.partialorder %v1276_v0, inf  ;;  %vm672_vm10 = vcmp.eq.f32.partialorder %v1276_v0, 0.0 }
  0xfd   :  { %966 = vrsqrt.f32 %v1299_v12  ;;  %v673_v49 = vand.u32 2147483648, %v1276_v0  ;;  %vm677_vm11 = vcmp.eq.f32.partialorder %v1262_v53, inf  ;;  %vm466_vm12 = vcmp.eq.f32.partialorder %v1242_v37, 0.0 }
  0xfe   :  { %968 = vrsqrt.f32 %v1251_v42  ;;  %v680_v58 = vand.u32 2147483648, %v1262_v53  ;;  %v767_v60 = vmul.f32 0.6, %v1271_v62  ;;  %vm679_vm13 = vcmp.eq.f32.partialorder %v1262_v53, 0.0 }
  0xff   :  { %v955_v4 = vpop.eup %954  ;;  %970 = vrsqrt.f32 %v1297_v11  ;;  %v1381_v3 = vmul.f32 0.6, %v461_v33  ;;  %vm478_vm14 = vcmp.eq.f32.partialorder %v1244_v39, inf  ;;  %v481_v62 = vand.u32 2147483648, %v1244_v39 }
 0x100   :  { %v662_v10 = vmul.f32 %v955_v4, %v1255_v43  ;;  %v957_v19 = vpop.eup %956  ;;  %850 = vxpose.xlu1.b32.cont [4/16] (narrow) %v440_v20, 8  ;;  %v1321_v22 = vpop.xlane.xlu0 %625  ;;  %v769_v4 = vmul.f32 0.6, %v440_v20  ;;  %v495_v7 = vand.u32 2147483648, %v1248_v41  ;;  %vm684_vm15 = vcmp.eq.f32.partialorder %v1299_v12, inf }
 0x101   :  { %v655_v25 = vmul.f32 %v957_v19, %v1265_v54  ;;  %v1333_v31 = vpop.xlane.xlu1 %628  ;;  %972 = vrsqrt.f32 %v1321_v22  ;;  %vm471_vm0 = vcmp.eq.f32.partialorder %v1251_v42, inf  ;;  %vm480_vm1 = vcmp.eq.f32.partialorder %v1244_v39, 0.0 }
 0x102   :  { %v664_v26 = vsel %vm663_vm4, %v1255_v43, %v662_v10  ;;  %974 = vrsqrt.f32 %v1333_v31  ;;  %v687_v16 = vand.u32 2147483648, %v1299_v12  ;;  %vm691_vm2 = vcmp.eq.f32.partialorder %v1297_v11, inf }
 0x103   :  { %v959_v27 = vpop.eup %958  ;;  %v657_v32 = vsel %vm656_vm5, %v1265_v54, %v655_v25  ;;  %v1347_v44 = vsel %vm665_vm7, %v666_v30, %v664_v26  ;;  %976 = vrsqrt.f32 %v1258_v45  ;;  %vm686_vm3 = vcmp.eq.f32.partialorder %v1299_v12, 0.0 }
 0x104   :  { %v961_v34 = vpop.eup %960  ;;  %v1345_v40 = vsel %vm658_vm6, %v659_v29, %v657_v32  ;;  %v676_v47 = vmul.f32 %v959_v27, %v1262_v53  ;;  %851 = vxpose.xlu1.b32.cont [5/16] (narrow) %v447_v15, 8  ;;  %v1353_v48 = vpop.xlane.xlu0 %631  ;;  %v783_v52 = vmul.f32 0.4, %v1347_v44  ;;  %978 = vrsqrt.f32 %v1248_v41 }
 0x105   :  { %v963_v46 = vpop.eup %962  ;;  %v669_v43 = vmul.f32 %v961_v34, %v1276_v0  ;;  %v782_v35 = vmul.f32 0.4, %v1345_v40  ;;  %v1371_v63 = vpop.xlane.xlu1 %634  ;;  %980 = vrsqrt.f32 %v1353_v48  ;;  %v694_v27 = vand.u32 2147483648, %v1297_v11 }
 0x106   :  { %v965_v50 = vpop.eup %964  ;;  %v463_v56 = vmul.f32 %v963_v46, %v1242_v37  ;;  %v678_v1 = vsel %vm677_vm11, %v1262_v53, %v676_v47  ;;  %v799_v5 = vadd.f32 %v783_v52, %v767_v60  ;;  %982 = vrsqrt.f32 %v1371_v63 }
 0x107   :  { %v798_v51 = vadd.f32 %v782_v35, %v766_v36  ;;  %v671_v54 = vsel %vm670_vm9, %v1276_v0, %v669_v43  ;;  %v967_v55 = vpop.eup %966  ;;  %v1389_v53 = vsel %vm679_vm13, %v680_v58, %v678_v1  ;;  %v477_v21 = vmul.f32 %v965_v50, %v1244_v39 }
 0x108   :  { %v1366_v57 = vsel %vm672_vm10, %v673_v49, %v671_v54  ;;  %v969_v59 = vpop.eup %968  ;;  %v683_v61 = vmul.f32 %v967_v55, %v1299_v12  ;;  %852 = vxpose.xlu1.b32.cont [6/16] (narrow) %v1343_v38, 8  ;;  %v1374_v0 = vpop.xlane.xlu0 %637  ;;  %v465_v10 = vsel %vm464_vm8, %v1242_v37, %v463_v56  ;;  %v785_v20 = vmul.f32 0.4, %v1389_v53 }
 0x109   :  { %814 = vxpose.xlu0.b32.start [1/16] (narrow) %v798_v51, 8  ;;  %v971_v2 = vpop.eup %970  ;;  %v784_v6 = vmul.f32 0.4, %v1366_v57  ;;  %v470_v8 = vmul.f32 %v969_v59, %v1251_v42  ;;  %v1405_v17 = vpop.xlane.xlu1 %640  ;;  %v468_v24 = vsel %vm466_vm12, %v467_v18, %v465_v10  ;;  %v474_v30 = vand.u32 2147483648, %v1251_v42 }
 0x10a   :  { %v690_v9 = vmul.f32 %v971_v2, %v1297_v11  ;;  %v685_v14 = vsel %vm684_vm15, %v1299_v12, %v683_v61  ;;  %vm693_vm4 = vcmp.eq.f32.partialorder %v1297_v11, 0.0  ;;  %v771_v18 = vmul.f32 0.6, %v1343_v38 }
 0x10b   :  { %v973_v15 = vpop.eup %972  ;;  %v800_v19 = vadd.f32 %v784_v6, %v1328_v28  ;;  %v472_v25 = vsel %vm471_vm0, %v1251_v42, %v470_v8  ;;  %v1416_v26 = vsel %vm686_vm3, %v687_v16, %v685_v14  ;;  %vm473_vm5 = vcmp.eq.f32.partialorder %v1251_v42, 0.0 }
 0x10c   :  { %853 = vxpose.xlu1.b32.cont [7/16] (narrow) %v461_v33, 8  ;;  %v1397_v13 = vpop.xlane.xlu0 %402  ;;  %v975_v29 = vpop.eup %974  ;;  %v697_v28 = vmul.f32 %v973_v15, %v1321_v22  ;;  %v692_v37 = vsel %vm691_vm2, %v1297_v11, %v690_v9  ;;  %vm698_vm6 = vcmp.eq.f32.partialorder %v1321_v22, inf  ;;  %v1431_v33 = vsel %vm473_vm5, %v474_v30, %v472_v25 }
 0x10d   :  { %815 = vxpose.xlu0.b32.cont [2/16] (narrow) %v799_v5, 8  ;;  %984 = vrsqrt.f32 %v1397_v13  ;;  %v977_v12 = vpop.eup %976  ;;  %v801_v34 = vadd.f32 %v785_v20, %v769_v4  ;;  %v1433_v46 = vpop.xlane.xlu1 %643  ;;  %v479_v47 = vsel %vm478_vm14, %v1244_v39, %v477_v21  ;;  %v786_v11 = vmul.f32 0.4, %v1416_v26 }
 0x10e   :  { %v979_v36 = vpop.eup %978  ;;  %v704_v38 = vmul.f32 %v975_v29, %v1333_v31  ;;  %v1441_v42 = vsel %vm693_vm4, %v694_v27, %v692_v37  ;;  %vm492_vm7 = vcmp.eq.f32.partialorder %v1248_v41, inf  ;;  %v701_v43 = vand.u32 2147483648, %v1321_v22 }
 0x10f   :  { %v484_v35 = vmul.f32 %v977_v12, %v1258_v45  ;;  %v699_v50 = vsel %vm698_vm6, %v1321_v22, %v697_v28  ;;  %vm700_vm8 = vcmp.eq.f32.partialorder %v1321_v22, 0.0  ;;  %vm705_vm9 = vcmp.eq.f32.partialorder %v1333_v31, inf  ;;  %v981_v51 = vpop.eup %980 }
 0x110   :  { %854 = vxpose.xlu1.b32.cont [8/16] (narrow) %v468_v24, 8  ;;  %v1421_v32 = vpop.xlane.xlu0 %405  ;;  %v773_v52 = vmul.f32 0.6, %v468_v24  ;;  %vm485_vm10 = vcmp.eq.f32.partialorder %v1258_v45, inf  ;;  %vm487_vm11 = vcmp.eq.f32.partialorder %v1258_v45, 0.0  ;;  %v983_v54 = vpop.eup %982  ;;  %v1461_v55 = vsel %vm480_vm1, %v481_v62, %v479_v47 }
 0x111   :  { %816 = vxpose.xlu0.b32.cont [3/16] (narrow) %v800_v19, 8  ;;  %986 = vrsqrt.f32 %v1421_v32  ;;  %v802_v56 = vadd.f32 %v786_v11, %v1323_v23  ;;  %v787_v22 = vmul.f32 0.4, %v1441_v42  ;;  %vm494_vm12 = vcmp.eq.f32.partialorder %v1248_v41, 0.0  ;;  %v1474_v23 = vpop.xlane.xlu1 %646 }
 0x112   :  { %988 = vrsqrt.f32 %v1374_v0  ;;  %v708_v58 = vand.u32 2147483648, %v1333_v31  ;;  %v1468_v60 = vsel %vm700_vm8, %v701_v43, %v699_v50  ;;  %v706_v61 = vsel %vm705_vm9, %v1333_v31, %v704_v38 }
 0x113   :  { %vm707_vm13 = vcmp.eq.f32.partialorder %v1333_v31, 0.0  ;;  %v711_v39 = vmul.f32 %v981_v51, %v1353_v48  ;;  %v486_v1 = vsel %vm485_vm10, %v1258_v45, %v484_v35  ;;  %v488_v2 = vand.u32 2147483648, %v1258_v45 }
 0x114   :  { %855 = vxpose.xlu1.b32.cont [9/16] (narrow) %v1431_v33, 8  ;;  %v1447_v49 = vpop.xlane.xlu0 %408  ;;  %v491_v62 = vmul.f32 %v979_v36, %v1248_v41  ;;  %v718_v5 = vmul.f32 %v983_v54, %v1371_v63  ;;  %vm712_vm14 = vcmp.eq.f32.partialorder %v1353_v48, inf  ;;  %vm719_vm15 = vcmp.eq.f32.partialorder %v1371_v63, inf }
 0x115   :  { %817 = vxpose.xlu0.b32.cont [4/16] (narrow) %v801_v34, 8  ;;  %990 = vrsqrt.f32 %v1447_v49  ;;  %v803_v31 = vadd.f32 %v787_v22, %v771_v18  ;;  %v788_v6 = vmul.f32 0.4, %v1468_v60  ;;  %v1488_v8 = vsel %vm707_vm13, %v708_v58, %v706_v61  ;;  %v1511_v27 = vpop.xlane.xlu1 %649 }
 0x116   :  { %992 = vrsqrt.f32 %v1405_v17  ;;  %v1494_v14 = vsel %vm487_vm11, %v488_v2, %v486_v1  ;;  %vm499_vm0 = vcmp.eq.f32.partialorder %v1397_v13, inf  ;;  %v715_v15 = vand.u32 2147483648, %v1353_v48 }
 0x117   :  { %v985_v59 = vpop.eup %984  ;;  %v493_v16 = vsel %vm492_vm7, %v1248_v41, %v491_v62  ;;  %v713_v19 = vsel %vm712_vm14, %v1353_v48, %v711_v39  ;;  %vm714_vm1 = vcmp.eq.f32.partialorder %v1353_v48, 0.0  ;;  %vm721_vm2 = vcmp.eq.f32.partialorder %v1371_v63, 0.0 }
 0x118   :  { %856 = vxpose.xlu1.b32.cont [10/16] (narrow) %v1461_v55, 8  ;;  %v1481_v4 = vpop.xlane.xlu0 %411  ;;  %v498_v9 = vmul.f32 %v985_v59, %v1397_v13  ;;  %v789_v20 = vmul.f32 0.4, %v1488_v8  ;;  %v502_v21 = vand.u32 2147483648, %v1397_v13  ;;  %v720_v24 = vsel %vm719_vm15, %v1371_v63, %v718_v5 }
 0x119   :  { %818 = vxpose.xlu0.b32.cont [5/16] (narrow) %v802_v56, 8  ;;  %994 = vrsqrt.f32 %v1481_v4  ;;  %v722_v25 = vand.u32 2147483648, %v1371_v63  ;;  %v804_v29 = vadd.f32 %v788_v6, %v1381_v3  ;;  %vm501_vm3 = vcmp.eq.f32.partialorder %v1397_v13, 0.0  ;;  %v1546_v50 = vpop.xlane.xlu1 %652 }
 0x11a   :  { %996 = vrsqrt.f32 %v1433_v46  ;;  %v500_v28 = vsel %vm499_vm0, %v1397_v13, %v498_v9  ;;  %v1522_v37 = vsel %vm494_vm12, %v495_v7, %v493_v16  ;;  %v1524_v12 = vsel %vm714_vm1, %v715_v15, %v713_v19 }
 0x11b   :  { %v987_v10 = vpop.eup %986  ;;  %998 = vrsqrt.f32 %v1474_v23  ;;  %vm506_vm4 = vcmp.eq.f32.partialorder %v1421_v32, inf  ;;  %vm726_vm5 = vcmp.eq.f32.partialorder %v1374_v0, inf  ;;  %v805_v18 = vadd.f32 %v789_v20, %v773_v52 }
 0x11c   :  { %857 = vxpose.xlu1.b32.cont [11/16] (narrow) %v1494_v14, 8  ;;  %v989_v45 = vpop.eup %988  ;;  %v505_v48 = vmul.f32 %v987_v10, %v1421_v32  ;;  %v1530_v34 = vsel %vm501_vm3, %v502_v21, %v500_v28  ;;  %v509_v47 = vand.u32 2147483648, %v1421_v32  ;;  %v1535_v41 = vsel %vm721_vm2, %v722_v25, %v720_v24 }
 0x11d   :  { %819 = vxpose.xlu0.b32.cont [6/16] (narrow) %v803_v31, 8  ;;  %v725_v3 = vmul.f32 %v989_v45, %v1374_v0  ;;  %v790_v7 = vmul.f32 0.4, %v1524_v12  ;;  %vm508_vm6 = vcmp.eq.f32.partialorder %v1421_v32, 0.0  ;;  %1000 = vrsqrt.f32 %v1511_v27 }
 0x11e   :  { %v507_v11 = vsel %vm506_vm4, %v1421_v32, %v505_v48  ;;  %vm513_vm7 = vcmp.eq.f32.partialorder %v1447_v49, inf  ;;  %v729_v43 = vand.u32 2147483648, %v1374_v0  ;;  %v774_v63 = vmul.f32 0.6, %v1431_v33 }
 0x11f   :  { %v991_v30 = vpop.eup %990  ;;  %v727_v32 = vsel %vm726_vm5, %v1374_v0, %v725_v3  ;;  %vm728_vm8 = vcmp.eq.f32.partialorder %v1374_v0, 0.0  ;;  %v510_v52 = vsel %vm508_vm6, %v509_v47, %v507_v11  ;;  %v791_v54 = vmul.f32 0.4, %v1535_v41 }
 0x120   :  { %858 = vxpose.xlu1.b32.cont [12/16] (narrow) %v1522_v37, 8  ;;  %v993_v13 = vpop.eup %992  ;;  %v512_v36 = vmul.f32 %v991_v30, %v1447_v49  ;;  %v516_v56 = vand.u32 2147483648, %v1447_v49  ;;  %vm733_vm9 = vcmp.eq.f32.partialorder %v1405_v17, inf  ;;  %v806_v33 = vadd.f32 %v790_v7, %v774_v63 }
 0x121   :  { %820 = vxpose.xlu0.b32.cont [7/16] (narrow) %v804_v29, 8  ;;  %v732_v35 = vmul.f32 %v993_v13, %v1405_v17  ;;  %vm515_vm10 = vcmp.eq.f32.partialorder %v1447_v49, 0.0  ;;  %1002 = vrsqrt.f32 %v1546_v50  ;;  %v1560_v59 = vsel %vm728_vm8, %v729_v43, %v727_v32 }
 0x122   :  { %v514_v22 = vsel %vm513_vm7, %v1447_v49, %v512_v36  ;;  %vm520_vm11 = vcmp.eq.f32.partialorder %v1481_v4, inf  ;;  %v736_v0 = vand.u32 2147483648, %v1405_v17  ;;  %v775_v39 = vmul.f32 0.6, %v1461_v55 }
 0x123   :  { %v995_v38 = vpop.eup %994  ;;  %v734_v1 = vsel %vm733_vm9, %v1405_v17, %v732_v35  ;;  %vm735_vm12 = vcmp.eq.f32.partialorder %v1405_v17, 0.0  ;;  %v517_v2 = vsel %vm515_vm10, %v516_v56, %v514_v22  ;;  %v523_v62 = vand.u32 2147483648, %v1481_v4 }
 0x124   :  { %859 = vxpose.xlu1.b32.cont [13/16] (narrow) %v1530_v34, 8  ;;  %v997_v51 = vpop.eup %996  ;;  %v519_v58 = vmul.f32 %v995_v38, %v1481_v4  ;;  %vm740_vm13 = vcmp.eq.f32.partialorder %v1433_v46, inf  ;;  %v807_v5 = vadd.f32 %v791_v54, %v775_v39  ;;  %v792_v31 = vmul.f32 0.4, %v1560_v59 }
 0x125   :  { %821 = vxpose.xlu0.b32.cont [8/16] (narrow) %v805_v18, 8  ;;  %v739_v61 = vmul.f32 %v997_v51, %v1433_v46  ;;  %v999_v49 = vpop.eup %998  ;;  %vm522_vm14 = vcmp.eq.f32.partialorder %v1481_v4, 0.0  ;;  %v737_v55 = vsel %vm735_vm12, %v736_v0, %v734_v1  ;;  %v743_v9 = vand.u32 2147483648, %v1433_v46 }
 0x126   :  { %v521_v6 = vsel %vm520_vm11, %v1481_v4, %v519_v58  ;;  %v746_v10 = vmul.f32 %v999_v49, %v1474_v23  ;;  %v776_v17 = vmul.f32 0.6, %v1494_v14  ;;  %vm742_vm15 = vcmp.eq.f32.partialorder %v1433_v46, 0.0 }
 0x127   :  { %v741_v15 = vsel %vm740_vm13, %v1433_v46, %v739_v61  ;;  %v1001_v16 = vpop.eup %1000  ;;  %v524_v19 = vsel %vm522_vm14, %v523_v62, %v521_v6  ;;  %vm747_vm0 = vcmp.eq.f32.partialorder %v1474_v23, inf  ;;  %v793_v20 = vmul.f32 0.4, %v737_v55 }
 0x128   :  { %860 = vxpose.xlu1.b32.cont [14/16] (narrow) %v510_v52, 8  ;;  %v808_v45 = vadd.f32 %v792_v31, %v776_v17  ;;  %v744_v4 = vsel %vm742_vm15, %v743_v9, %v741_v15  ;;  %v750_v21 = vand.u32 2147483648, %v1474_v23  ;;  %v753_v24 = vmul.f32 %v1001_v16, %v1511_v27 }
 0x129   :  { %822 = vxpose.xlu0.b32.cont [9/16] (narrow) %v806_v33, 8  ;;  %v777_v25 = vmul.f32 0.6, %v1522_v37  ;;  %v748_v14 = vsel %vm747_vm0, %v1474_v23, %v746_v10  ;;  %vm749_vm1 = vcmp.eq.f32.partialorder %v1474_v23, 0.0  ;;  %vm754_vm2 = vcmp.eq.f32.partialorder %v1511_v27, inf }
 0x12a   :  { %v778_v29 = vmul.f32 0.6, %v1530_v34  ;;  %v794_v48 = vmul.f32 0.4, %v744_v4  ;;  %v751_v30 = vsel %vm749_vm1, %v750_v21, %v748_v14  ;;  %v757_v3 = vand.u32 2147483648, %v1511_v27 }
 0x12b   :  { %v1003_v46 = vpop.eup %1002  ;;  %v809_v28 = vadd.f32 %v793_v20, %v777_v25  ;;  %v755_v37 = vsel %vm754_vm2, %v1511_v27, %v753_v24  ;;  %vm756_vm3 = vcmp.eq.f32.partialorder %v1511_v27, 0.0  ;;  %vm761_vm4 = vcmp.eq.f32.partialorder %v1546_v50, inf }
 0x12c   :  { %861 = vxpose.xlu1.b32.cont [15/16] (narrow) %v517_v2, 8  ;;  %v760_v13 = vmul.f32 %v1003_v46, %v1546_v50  ;;  %v779_v23 = vmul.f32 0.6, %v510_v52  ;;  %v810_v18 = vadd.f32 %v794_v48, %v778_v29  ;;  %v795_v47 = vmul.f32 0.4, %v751_v30 }
 0x12d   :  { %823 = vxpose.xlu0.b32.cont [10/16] (narrow) %v807_v5, 8  ;;  %v758_v7 = vsel %vm756_vm3, %v757_v3, %v755_v37  ;;  %v764_v34 = vand.u32 2147483648, %v1546_v50  ;;  %vm763_vm5 = vcmp.eq.f32.partialorder %v1546_v50, 0.0  ;;  %v780_v36 = vmul.f32 0.6, %v517_v2 }
 0x12e   :  { %v762_v11 = vsel %vm761_vm4, %v1546_v50, %v760_v13  ;;  %v811_v38 = vadd.f32 %v795_v47, %v779_v23  ;;  %v796_v43 = vmul.f32 0.4, %v758_v7  ;;  %v781_v63 = vmul.f32 0.6, %v524_v19 }
 0x12f   :  { %v765_v35 = vsel %vm763_vm5, %v764_v34, %v762_v11 }
 0x130   :  { %862 = vxpose.xlu1.b32.end [16/16] (narrow) %v524_v19, 8  ;;  %v812_v27 = vadd.f32 %v796_v43, %v780_v36  ;;  %v797_v32 = vmul.f32 0.4, %v765_v35 }
 0x131   :  { %824 = vxpose.xlu0.b32.cont [11/16] (narrow) %v808_v45, 8 }
 0x132   :  { %v813_v51 = vadd.f32 %v797_v32, %v781_v63 }
 0x135   :  { %825 = vxpose.xlu0.b32.cont [12/16] (narrow) %v809_v28, 8 }
 0x139   :  { %826 = vxpose.xlu0.b32.cont [13/16] (narrow) %v810_v18, 8 }
 0x13d   :  { %827 = vxpose.xlu0.b32.cont [14/16] (narrow) %v811_v38, 8 }
 0x141   :  { %828 = vxpose.xlu0.b32.cont [15/16] (narrow) %v812_v27, 8 }
 0x145   :  { %829 = vxpose.xlu0.b32.end [16/16] (narrow) %v813_v51, 8 }
 0x149   :  { %880 = vxpose.xlu0.b32.start [1/16] (narrow) %v1345_v40, 8 }
 0x14d   :  { %881 = vxpose.xlu0.b32.cont [2/16] (narrow) %v1347_v44, 8 }
 0x151   :  { %882 = vxpose.xlu0.b32.cont [3/16] (narrow) %v1366_v57, 8 }
 0x155   :  { %883 = vxpose.xlu0.b32.cont [4/16] (narrow) %v1389_v53, 8 }
 0x159   :  { %884 = vxpose.xlu0.b32.cont [5/16] (narrow) %v1416_v26, 8 }
 0x15d   :  { %885 = vxpose.xlu0.b32.cont [6/16] (narrow) %v1441_v42, 8 }
 0x161   :  { %886 = vxpose.xlu0.b32.cont [7/16] (narrow) %v1468_v60, 8 }
 0x165   :  { %887 = vxpose.xlu0.b32.cont [8/16] (narrow) %v1488_v8, 8 }
 0x169   :  { %888 = vxpose.xlu0.b32.cont [9/16] (narrow) %v1524_v12, 8 }
 0x16d   :  { %889 = vxpose.xlu0.b32.cont [10/16] (narrow) %v1535_v41, 8 }
 0x171   :  { %890 = vxpose.xlu0.b32.cont [11/16] (narrow) %v1560_v59, 8 }
 0x174   :  { %v863_v40 = vpop.trf.xlu1 }
 0x175   :  { %891 = vxpose.xlu0.b32.cont [12/16] (narrow) %v737_v55, 8  ;;  %879 = vst [vmem:[#allocation10 + $0x1] sm:$0x1] %v863_v40 }
 0x179   :  { %892 = vxpose.xlu0.b32.cont [13/16] (narrow) %v744_v4, 8 }
 0x17d   :  { %893 = vxpose.xlu0.b32.cont [14/16] (narrow) %v751_v30, 8 }
 0x181   :  { %894 = vxpose.xlu0.b32.cont [15/16] (narrow) %v758_v7, 8 }
 0x185   :  { %895 = vxpose.xlu0.b32.end [16/16] (narrow) %v765_v35, 8 }
 0x189   :  { %v830_v44 = vpop.trf.xlu0 }
 0x18a   :  { %846 = vst [vmem:[#allocation10] sm:$0x1] %v830_v44 }
 0x1c9   :  { %v896_v57 = vpop.trf.xlu0 }
 0x1ca   :  { %912 = vst [vmem:[#allocation10 + $0x2] sm:$0x1] %v896_v57 }
 0x1cb   :  { %1103 = shalt.err (!%p1100_p8)
}
 0x1cc   :  { %s1104_s17 = scalar_lea.hbm %s1621_s4, 64 }
 0x1cd   :  { %p1105_p9 = scmp.ne.s32.totalorder %s1621_s4, %s1104_s17  ;;  %p1108_p10 = scmp.lt.u32.totalorder %s1104_s17, %s1621_s4 }
 0x1cf   :  { %p1110_p11 = pnand %p1108_p10, %p1105_p9 }
 0x1d1   :  { %1113 = shalt.err (!%p1110_p11)
}
 0x1d2   :  { %922 = dma.vmem_to_hbm [thread:$0]  %s920_s26, 64, %s1621_s4, [#allocation4]  }
 0x1d3   :  { %1120 = dma.done.wait [#allocation4], 64  }
 0x1d4   :  { %1121 = vsyncadd [#allocation4], 4294967232 }
 0x1d5   :  { %926 = vsyncpa [#allocation3], 1 }
 0x1d6   :  { %927 = vsyncpa [#allocation6], 1 }
 0x1d7   :  { %928 = vsyncpa [#allocation9], 1 }
 0x1d8   :  { %929 = vsyncpa [#allocation4], 1 }

</bundles_post_ra>
